<compile_context>
chip_gen: v5e
topology: v5e:2x2
jax: 0.10.0
libtpu: 0.0.40
codegen_flags: <defaults>
</compile_context>

<pallas_src>
import math
import numpy as np
import jax
import jax.numpy as jnp
from jax.experimental import pallas as pl
from jax.experimental.pallas import tpu as pltpu


def _odefunc_im_kernel(w_ref, y_ref, o_ref):
    # w_ref: (3,) f32 in SMEM (Conv1d taps, cross-correlation order)
    # y_ref/o_ref: (TB, N) tiles in VMEM
    w0 = w_ref[0]
    w1 = w_ref[1]
    w2 = w_ref[2]
    y = y_ref[...].astype(jnp.float32)
    n = y.shape[1]
    left = pltpu.roll(y, shift=1, axis=1)        # y[b, (i-1) % N]
    right = pltpu.roll(y, shift=n - 1, axis=1)   # y[b, (i+1) % N]  (== shift -1)
    o_ref[...] = (w0 * left + w1 * y + w2 * right).astype(o_ref.dtype)


def _vmem_capacity_bytes():
    """Physical VMEM per TensorCore; conservative fallback = v7x (64 MiB)."""
    try:
        return int(pltpu.get_tpu_info().vmem_capacity_bytes)
    except Exception:
        return 64 << 20


def _pick_tile_b(B, N, itemsize, vmem_cap):
    """Batch-tile rows: bytes-targeted, multiple-of-8, and >=2-4 grid steps.

    Pipeline footprint model: (in + out) x 2 pipeline buffers = 4 tile buffers.
    We target 1-4 MiB per tile buffer (HBM-roofline band for f32 streaming)
    while keeping the total pipeline footprint under ~half of physical VMEM.
    """
    pipeline_budget = min(vmem_cap // 2, 48 << 20)        # <= 24 MiB on v7x, 48 MiB on v5e/v6e
    per_buffer_target = min(4 << 20, pipeline_budget // 4)
    row_bytes = N * itemsize
    tb = max(1, per_buffer_target // row_bytes)
    if tb >= 8:
        tb = (tb // 8) * 8        # f32 sublane packing
    tb = min(tb, B)
    # Ensure the batch grid has >=2 (ideally >=4) steps whenever B permits, so
    # v7x's two TensorCores both stream and DMA overlaps compute everywhere.
    if B >= 16:
        desired_steps = 4 if B >= 32 else 2
        cap = max(8, (pl.cdiv(B, desired_steps) // 8) * 8)
        tb = min(tb, cap)
    return max(1, tb)


def odefunc_im_forward(w, y):
    """Pallas forward of ODEFuncIM: circular 3-tap Conv1d, no bias.

    w: (3,) float32 taps; y: (B, N) state on a periodic 1-D grid (f32 or bf16).
    """
    B, N = y.shape
    itemsize = jnp.dtype(y.dtype).itemsize
    vmem_cap = _vmem_capacity_bytes()
    tb = _pick_tile_b(B, N, itemsize, vmem_cap)

    # Double-buffered in + out footprint; derive the scoped-VMEM limit from it
    # (raises v5e's 16 MiB default, stays under physical VMEM on every gen).
    footprint = 4 * tb * N * itemsize
    vmem_limit = int(min(vmem_cap - (8 << 20), max(32 << 20, footprint + (4 << 20))))
    # TODO(synk): for N so large that even a 1-row double-buffered tile exceeds
    # VMEM (~>3M f32 points), tile N with explicit circular halo handling.

    grid = (pl.cdiv(B, tb),)
    return pl.pallas_call(
        _odefunc_im_kernel,
        out_shape=jax.ShapeDtypeStruct((B, N), y.dtype),
        grid=grid,
        in_specs=[
            # Weights: 3 scalars, whole array in SMEM every grid step.
            pl.BlockSpec(memory_space=pltpu.SMEM),
            # Batch-tiled input; full N per tile so the circular roll is exact.
            # (N a multiple of 128 keeps the store path lane-dense / unmasked.)
            pl.BlockSpec((tb, N), lambda i: (i, 0)),
        ],
        out_specs=pl.BlockSpec((tb, N), lambda i: (i, 0)),
        compiler_params=pltpu.CompilerParams(
            # Batch tiles are independent -> shard across v7x's 2 TensorCores.
            dimension_semantics=("parallel",),
            vmem_limit_bytes=vmem_limit,
        ),
    )(w, y)


def odefunc_im_reference(w, y):
    # Pure-JAX reference matching torch Conv1d with circular 'same' padding.
    yf = y.astype(jnp.float32)
    left = jnp.roll(yf, 1, axis=1)
    right = jnp.roll(yf, -1, axis=1)
    return (w[0] * left + w[1] * yf + w[2] * right).astype(y.dtype)


if __name__ == "__main__":
    key = jax.random.PRNGKey(0)
    k_w, k_y1, k_y2 = jax.random.split(key, 3)

    # Deterministic weight init replicating nn.init.uniform_(-sqrt(1/3), sqrt(1/3))
    # for the (1, 1, 3) Conv1d weight (flattened to 3 taps).
    bound = math.sqrt(1.0 / 3.0)
    w = jax.random.uniform(k_w, (3,), jnp.float32, minval=-bound, maxval=bound)

    # Test 1: small Burgers-like input. B=8 fills one vreg of sublanes, N=128
    # is a single lane tile.
    B1, N1 = 8, 128
    y1 = jax.random.normal(k_y1, (B1, N1), jnp.float32)
    out1 = jax.block_until_ready(odefunc_im_forward(w, y1))
    ref1 = odefunc_im_reference(w, y1)
    assert out1.shape == (B1, N1) and out1.dtype == jnp.float32
    np.testing.assert_allclose(np.asarray(out1), np.asarray(ref1), rtol=1e-5, atol=1e-5)

    # Test 2: N > 128 (roll crosses vreg lane-tile boundaries) and B large
    # enough that the tile picker produces a multi-step batch grid.
    B2, N2 = 16, 256
    y2 = jax.random.normal(k_y2, (B2, N2), jnp.float32)
    out2 = jax.block_until_ready(odefunc_im_forward(w, y2))
    ref2 = odefunc_im_reference(w, y2)
    np.testing.assert_allclose(np.asarray(out2), np.asarray(ref2), rtol=1e-5, atol=1e-5)

    # TODO(synk): self.nfe is Python-side call bookkeeping, not device compute.
    # TODO(synk): the dominant perf lever for the real ODE solve is fusing
    # multiple RHS evaluations (RK stages / explicit time steps) into one
    # pallas_call with the state tile resident in VMEM scratch, cutting HBM
    # traffic ~k-fold; that changes solver-level (not forward-pass) semantics,
    # so it is left to the solver wrapper.
    print("KERNEL_OK")
</pallas_src>

<mosaic_0001>
module attributes {stable_mosaic.version = 11 : i64} {
  func.func @_odefunc_im_kernel(%arg0: i32, %arg1: memref<3xf32, #tpu.memory_space<smem>>, %arg2: memref<8x128xf32, #tpu.memory_space<vmem>>, %arg3: memref<8x128xf32, #tpu.memory_space<vmem>>) attributes {dimension_semantics = [#tpu.dimension_semantics<parallel>], iteration_bounds = array<i64: 1>, scalar_prefetch = 0 : i64, scratch_operands = 0 : i64, tpu.core_type = #tpu.core_type<tc>, window_params = [{transform_indices = @transform_0, window_bounds = array<i64: 3>}, {transform_indices = @transform_1, window_bounds = array<i64: 8, 128>}, {transform_indices = @transform_2, window_bounds = array<i64: 8, 128>}]} {
    %c0 = arith.constant 0 : index
    %0 = memref.load %arg1[%c0] : memref<3xf32, #tpu.memory_space<smem>>
    %c1 = arith.constant 1 : index
    %1 = memref.load %arg1[%c1] : memref<3xf32, #tpu.memory_space<smem>>
    %c2 = arith.constant 2 : index
    %2 = memref.load %arg1[%c2] : memref<3xf32, #tpu.memory_space<smem>>
    %c0_0 = arith.constant 0 : index
    %c0_1 = arith.constant 0 : index
    %3 = vector.load %arg2[%c0_0, %c0_1] : memref<8x128xf32, #tpu.memory_space<vmem>>, vector<8x128xf32>
    %c1_i32 = arith.constant 1 : i32
    %4 = tpu.dynamic_rotate %3 by %c1_i32 dim 1 : vector<8x128xf32>, i32 -> vector<8x128xf32>
    %c127_i32 = arith.constant 127 : i32
    %5 = tpu.dynamic_rotate %3 by %c127_i32 dim 1 : vector<8x128xf32>, i32 -> vector<8x128xf32>
    %6 = vector.broadcast %0 : f32 to vector<8x128xf32>
    %7 = arith.mulf %6, %4 : vector<8x128xf32>
    %8 = vector.broadcast %1 : f32 to vector<8x128xf32>
    %9 = arith.mulf %8, %3 : vector<8x128xf32>
    %10 = arith.addf %7, %9 : vector<8x128xf32>
    %11 = vector.broadcast %2 : f32 to vector<8x128xf32>
    %12 = arith.mulf %11, %5 : vector<8x128xf32>
    %13 = arith.addf %10, %12 : vector<8x128xf32>
    %c0_2 = arith.constant 0 : index
    %c0_3 = arith.constant 0 : index
    %14 = vector.load %arg3[%c0_2, %c0_3] : memref<8x128xf32, #tpu.memory_space<vmem>>, vector<8x128xf32>
    tpu.vector_store %arg3[%c0_2, %c0_3], %13 {strides = array<i32>} : memref<8x128xf32, #tpu.memory_space<vmem>>, vector<8x128xf32>,
    return
  }
  func.func @transform_0(%arg0: i32) -> i32 {
    %c0_i32 = arith.constant 0 : i32
    %c0_i32_0 = arith.constant 0 : i32
    return %c0_i32 : i32
  }
  func.func @transform_1(%arg0: i32) -> (i32, i32) {
    %c0_i32 = arith.constant 0 : i32
    %c0_i32_0 = arith.constant 0 : i32
    return %arg0, %c0_i32 : i32, i32
  }
  func.func @transform_2(%arg0: i32) -> (i32, i32) {
    %c0_i32 = arith.constant 0 : i32
    %c0_i32_0 = arith.constant 0 : i32
    return %arg0, %c0_i32 : i32, i32
  }
}

</mosaic_0001>

<bundles_post_ra>
// kernel: tpu_custom_call.1
= control target key start
LH: loop header
LB: loop body
LE: loop exit
PB: predicated region body
PF: predicated region fallthrough
CT: control target
= control target key end

     0   :  { %7 = vsyncpa [#allocation5], 0  ;;  %s176_s0 = inlined_call_operand.hbm [shape: f32[3], index: 0, kind: input, shape index: {}]   ;;  %s177_s1 = inlined_call_operand.hbm [shape: f32[8,128], index: 1, kind: input, shape index: {}]   ;;  %s178_s2 = inlined_call_operand.hbm [shape: f32[8,128], index: 2, kind: output, shape index: {}]  }
   0x1   :  { %8 = vsyncpa [#allocation3], 0 }
   0x2   :  { %9 = vsyncpa [#allocation4], 0  ;;  %s15_s11 = sshll.u32 %s176_s0, 4  ;;  %s24_s14 = sshll.u32 %s177_s1, 4  ;;  %s16_s11 = int_to_ptr.hbm [resolvable:$true] %s15_s11  ;;  %s25_s14 = int_to_ptr.hbm [resolvable:$true] %s24_s14 }
   0x3   :  { %s147_s15 = smov [#allocation2]   ;;  %s148_s16 = smov [#allocation6]  }
   0x4   :  { %18 = dma.hbm_to_smem %s16_s11, 16, %s147_s15, [#allocation5]  }
   0x5   :  { %s26_s17 = sshll.u32 %s148_s16, 4  ;;  %s27_s17 = int_to_ptr.vmem [resolvable:$true] %s26_s17 }
   0x6   :  { %29 = dma.hbm_to_vmem [thread:$0]  %s25_s14, 128, %s27_s17, [#allocation3]  }
   0x7   :  { %141 = dma.done.wait [#allocation5], 16  }
   0x8   :  { %142 = vsyncadd [#allocation5], 4294967280 }
   0x9   :  { %143 = dma.done.wait [#allocation3], 128  }
   0xa   :  { %144 = vsyncadd [#allocation3], 4294967168 }
   0xb   :  { %38 = sfence }
   0xc   :  { %v42_v0 = vld [vmem:[#allocation6] sm:$0xff]  ;;  %s149_s18 = smov 1   ;;  %s150_s0 = smov 127  }
   0xd   :  { %43 = vrot.lane.b32.xlu0 %v42_v0, %s149_s18  ;;  %s74_s19 = sld [smem:[#allocation2 + $0x1]]  ;;  %s151_s21 = smov [#allocation7]  }
   0xe   :  { %s39_s20 = sld [smem:[#allocation2]]  ;;  %s61_s22 = sshll.u32 %s151_s21, 4  ;;  %s62_s22 = int_to_ptr.vmem [resolvable:$true] %s61_s22 }
   0xf   :  { %s75_s1 = sld [smem:[#allocation2 + $0x2]]  ;;  %s63_s25 = sshll.u32 %s178_s2, 4  ;;  %s64_s25 = int_to_ptr.hbm [resolvable:$true] %s63_s25 }
  0x13   :  { %v49_v2 = vstv %s74_s19 }
  0x14   :  { %v47_v3 = vstv %s39_s20  ;;  %v50_v4 = vmul.f32 %v49_v2, %v42_v0 }
  0x15   :  { %45 = vrot.lane.b32.xlu0 %v42_v0, %s150_s0  ;;  %v52_v6 = vstv %s75_s1 }
  0x7f   :  { %v44_v1 = vpop.permute.xlu0 %43 }
  0x80   :  { %v48_v5 = vmul.f32 %v47_v3, %v44_v1 }
  0x82   :  { %v51_v8 = vadd.f32 %v50_v4, %v48_v5 }
  0x87   :  { %v46_v7 = vpop.permute.xlu0 %45 }
  0x88   :  { %v53_v9 = vmul.f32 %v52_v6, %v46_v7 }
  0x8a   :  { %v54_v10 = vadd.f32 %v53_v9, %v51_v8 }
  0x8c   :  { %55 = vst [vmem:[#allocation7] sm:$0xff] %v54_v10 }
  0x8d   :  { %66 = dma.vmem_to_hbm [thread:$0]  %s62_s22, 128, %s64_s25, [#allocation4]  }
  0x8e   :  { %145 = dma.done.wait [#allocation4], 128  }
  0x8f   :  { %146 = vsyncadd [#allocation4], 4294967168 }
  0x90   :  { %71 = vsyncpa [#allocation3], 1 }
  0x91   :  { %72 = vsyncpa [#allocation4], 1 }
  0x92   :  { %73 = vsyncpa [#allocation5], 1 }

</bundles_post_ra>
